<compile_context>
chip_gen: v6e
topology: v6e:2x2x1
jax: 0.10.0
libtpu: 0.0.40
codegen_flags: <defaults>
</compile_context>

<pallas_src>
import math
import functools

import jax
import jax.numpy as jnp
from jax import lax
from jax.experimental import pallas as pl
from jax.experimental.pallas import tpu as pltpu

HIDDEN = 32          # hidden_size
S_LEN = 16           # s_len (encoder sequence length)
D = 3                # windows (window radius)
WIN = 2 * D + 1      # window size
BS = 2               # batch size
SIGMA = D / 2.0
METHOD = "general"
# TODO(synk): the 'concat'/'dot' branches (and the unused self.v Linear) are not implemented.


# ----------------------------------------------------------------------------
# Fused kernel: pt -> window start -> attn Linear -> one-hot window gather ->
#               batched dot with s -> Gaussian weighting -> softmax
# ----------------------------------------------------------------------------
def _local_attention_kernel(enc_ref, s_ref, ww_ref, wb_ref, wvr_ref, vb_ref,
                            aw_ref, ab_ref, attn_ref, encw_ref,
                            *, bs, s_len, hidden, Dwin, sigma):
    win = 2 * Dwin + 1
    span = float(s_len - 2 * Dwin - 1)           # S in the PyTorch code
    nrow = bs * win                               # flattened (batch, window) rows
    ncol = bs * s_len                             # flattened (batch, seq) rows

    s = s_ref[...]                                                      # (bs, H)

    # ---- pt = S * sigmoid(omega_v(tanh(omega_w(s)))) + D  (fully on-chip) ----
    h = jnp.tanh(jnp.dot(s, ww_ref[...], preferred_element_type=jnp.float32)
                 + wb_ref[...])                                         # (bs, H)
    # omega_v (H -> 1): VPU multiply + lane reduce (no N=1 MXU matmul).
    sig = jnp.sum(h * wvr_ref[...], axis=1, keepdims=True) + vb_ref[...]  # (bs, 1)
    pt = span * jax.nn.sigmoid(sig) + Dwin                              # (bs, 1)
    ptf = jnp.floor(pt)                                                 # (bs, 1)
    # Window start per batch (clamped for safety; always in-range for valid S_LEN/D).
    start_i = jnp.clip(ptf - Dwin, 0.0, float(s_len - win)).astype(jnp.int32)  # (bs, 1)

    # ---- attn Linear over the full slab: ONE (bs*s_len, H) @ (H, H) matmul ----
    # (Row selection commutes with the affine map, so gather-after-linear is exact.)
    enc_w_full = (jnp.dot(enc_ref[...], aw_ref[...],
                          preferred_element_type=jnp.float32)
                  + ab_ref[...])                                        # (bs*s_len, H)

    # ---- Window row-selection as a one-hot matmul (no dynamic sublane slices) ----
    # Flat output row r = b*win + w picks flat source row  b*s_len + start_b + w.
    r_iota = lax.broadcasted_iota(jnp.int32, (nrow, 1), 0)              # (nrow, 1)
    c_iota = lax.broadcasted_iota(jnp.int32, (nrow, ncol), 1)           # (nrow, ncol)
    row_off = jnp.zeros((nrow, 1), jnp.int32)
    for b in range(bs):                       # tiny static loop: VPU index math only
        off_b = jnp.full((nrow, 1), b * (s_len - win), jnp.int32) + start_i[b:b + 1, :]
        in_b = (r_iota >= b * win) & (r_iota < (b + 1) * win)
        row_off = jnp.where(in_b, off_b, row_off)
    target = r_iota + row_off                                           # (nrow, 1)
    sel = jnp.where(c_iota == target, 1.0, 0.0).astype(jnp.float32)     # (nrow, ncol)
    enc_w_win = jnp.dot(sel, enc_w_full,
                        preferred_element_type=jnp.float32)             # (nrow, H)
    encw_ref[...] = enc_w_win.astype(encw_ref.dtype)                    # single store

    # ---- alpha_hat[b, w] = enc_w_win[b*win + w, :] . s[b, :]  (one MXU op) ----
    alpha2 = lax.dot_general(s, enc_w_win, (((1,), (1,)), ((), ())),
                             preferred_element_type=jnp.float32)        # (bs, nrow)
    row_ids = lax.broadcasted_iota(jnp.int32, (bs, win), 0)
    alpha_hat = jnp.zeros((bs, win), jnp.float32)
    for b in range(bs):                       # static lane slices + select (VPU)
        alpha_hat = jnp.where(row_ids == b,
                              alpha2[:, b * win:(b + 1) * win], alpha_hat)

    # ---- Gaussian position weights + softmax over the window ----
    # jpos[b, w] = floor(pt_b) - D + w ; gauss = exp(-(jpos - pt)^2 / (2 sigma^2))
    w_iota = lax.broadcasted_iota(jnp.int32, (bs, win), 1).astype(jnp.float32)
    jpos = ptf - Dwin + w_iota                                          # (bs, win)
    gauss = jnp.exp(-jnp.square(jpos - pt) / (2.0 * sigma * sigma))
    energies = alpha_hat * gauss
    m = jnp.max(energies, axis=1, keepdims=True)
    e = jnp.exp(energies - m)
    attn_ref[...] = (e / jnp.sum(e, axis=1, keepdims=True)).astype(attn_ref.dtype)


@jax.jit
def local_attention(enc_output, s, params):
    ww, wb, wv, vb, aw, ab = params
    bs, s_len, hidden = enc_output.shape
    enc_flat = enc_output.reshape(bs * s_len, hidden)   # free, layout-preserving
    wv_row = wv.reshape(1, hidden)                      # omega_v weight as a row vector

    kern = functools.partial(_local_attention_kernel, bs=bs, s_len=s_len,
                             hidden=hidden, Dwin=D, sigma=SIGMA)
    attn_w, encw_flat = pl.pallas_call(
        kern,
        out_shape=(jax.ShapeDtypeStruct((bs, WIN), jnp.float32),
                   jax.ShapeDtypeStruct((bs * WIN, hidden), jnp.float32)),
        in_specs=[pl.BlockSpec(memory_space=pltpu.MemorySpace.VMEM)] * 8,
        out_specs=(pl.BlockSpec(memory_space=pltpu.MemorySpace.VMEM),
                   pl.BlockSpec(memory_space=pltpu.MemorySpace.VMEM)),
    )(enc_flat, s, ww, wb, wv_row, vb, aw, ab)
    return attn_w, encw_flat.reshape(bs, WIN, hidden)


# ----------------------------------------------------------------------------
# Pure-JAX reference (same semantics as the PyTorch forward, 'general' branch)
# ----------------------------------------------------------------------------
def reference(enc_output, s, params):
    ww, wb, wv, vb, aw, ab = params
    h = jnp.tanh(s @ ww + wb)
    sig_inp = h @ wv + vb                                 # (BS, 1)
    S = S_LEN - 2 * D - 1
    pt = S * jax.nn.sigmoid(sig_inp) + D                  # (BS, 1)
    ptf = pt[:, 0]
    pti = jnp.floor(ptf).astype(jnp.int32)
    windows = [
        lax.dynamic_slice(enc_output[i], (pti[i] - D, 0), (WIN, HIDDEN))
        for i in range(BS)
    ]
    enc_w = jnp.stack(windows, axis=0)                    # (BS, WIN, H)
    enc_w = enc_w @ aw + ab                               # self.attn(enc_w)
    alpha = jnp.einsum("bwh,bh->bw", enc_w, s)            # bmm(enc_w, s[:,:,None])
    idx = jnp.arange(WIN, dtype=jnp.float32)
    jpos = jnp.floor(ptf)[:, None] - D + idx[None, :]
    gauss = jnp.exp(-jnp.square(jpos - ptf[:, None]) / (2.0 * SIGMA * SIGMA))
    energies = alpha * gauss
    return jax.nn.softmax(energies, axis=1), enc_w


if __name__ == "__main__":
    key = jax.random.PRNGKey(0)
    ks = jax.random.split(key, 8)
    scale = 1.0 / math.sqrt(HIDDEN)

    # nn.Linear parameters, stored transposed (in, out)
    ww = jax.random.uniform(ks[0], (HIDDEN, HIDDEN), jnp.float32, -scale, scale)  # omega_w
    wb = jax.random.uniform(ks[1], (1, HIDDEN), jnp.float32, -scale, scale)
    wv = jax.random.uniform(ks[2], (HIDDEN, 1), jnp.float32, -scale, scale)       # omega_v
    vb = jax.random.uniform(ks[3], (1, 1), jnp.float32, -scale, scale)
    aw = jax.random.uniform(ks[4], (HIDDEN, HIDDEN), jnp.float32, -scale, scale)  # attn ('general')
    ab = jax.random.uniform(ks[5], (1, HIDDEN), jnp.float32, -scale, scale)
    params = (ww, wb, wv, vb, aw, ab)

    enc_output = jax.random.normal(ks[6], (BS, S_LEN, HIDDEN), jnp.float32)
    s = jax.random.normal(ks[7], (BS, HIDDEN), jnp.float32)

    attn_w, enc_w_out = local_attention(enc_output, s, params)
    jax.block_until_ready((attn_w, enc_w_out))

    ref_attn, ref_encw = reference(enc_output, s, params)
    assert attn_w.shape == (BS, WIN) and enc_w_out.shape == (BS, WIN, HIDDEN)
    assert jnp.allclose(attn_w, ref_attn, atol=1e-4, rtol=1e-4)
    assert jnp.allclose(enc_w_out, ref_encw, atol=1e-4, rtol=1e-4)

    print("KERNEL_OK")
</pallas_src>

<mosaic_0001>
module attributes {stable_mosaic.version = 11 : i64} {
  func.func @_local_attention_kernel(%arg0: memref<32x32xf32, #tpu.memory_space<vmem>>, %arg1: memref<2x32xf32, #tpu.memory_space<vmem>>, %arg2: memref<32x32xf32, #tpu.memory_space<vmem>>, %arg3: memref<1x32xf32, #tpu.memory_space<vmem>>, %arg4: memref<1x32xf32, #tpu.memory_space<vmem>>, %arg5: memref<1x1xf32, #tpu.memory_space<vmem>>, %arg6: memref<32x32xf32, #tpu.memory_space<vmem>>, %arg7: memref<1x32xf32, #tpu.memory_space<vmem>>, %arg8: memref<2x7xf32, #tpu.memory_space<vmem>>, %arg9: memref<14x32xf32, #tpu.memory_space<vmem>>) attributes {dimension_semantics = [], scalar_prefetch = 0 : i64, scratch_operands = 0 : i64, tpu.core_type = #tpu.core_type<tc>} {
    %c0 = arith.constant 0 : index
    %c0_0 = arith.constant 0 : index
    %0 = vector.load %arg1[%c0, %c0_0] : memref<2x32xf32, #tpu.memory_space<vmem>>, vector<2x32xf32>
    %c0_1 = arith.constant 0 : index
    %c0_2 = arith.constant 0 : index
    %1 = vector.load %arg2[%c0_1, %c0_2] : memref<32x32xf32, #tpu.memory_space<vmem>>, vector<32x32xf32>
    %cst = arith.constant dense<0.000000e+00> : vector<2x32xf32>
    %2 = tpu.matmul %0, %1, %cst {dimension_numbers = #tpu.dot_dimension_numbers<[1], [0], [0], [1], [0, 0, 1, 1], [], []>} : vector<2x32xf32>, vector<32x32xf32>, vector<2x32xf32> -> vector<2x32xf32>
    %c0_3 = arith.constant 0 : index
    %c0_4 = arith.constant 0 : index
    %3 = vector.load %arg3[%c0_3, %c0_4] : memref<1x32xf32, #tpu.memory_space<vmem>>, vector<1x32xf32>
    %4 = vector.broadcast %3 : vector<1x32xf32> to vector<2x32xf32>
    %5 = arith.addf %2, %4 : vector<2x32xf32>
    %6 = math.tanh %5 : vector<2x32xf32>
    %c0_5 = arith.constant 0 : index
    %c0_6 = arith.constant 0 : index
    %7 = vector.load %arg4[%c0_5, %c0_6] : memref<1x32xf32, #tpu.memory_space<vmem>>, vector<1x32xf32>
    %8 = vector.broadcast %7 : vector<1x32xf32> to vector<2x32xf32>
    %9 = arith.mulf %6, %8 : vector<2x32xf32>
    %cst_7 = arith.constant dense<0.000000e+00> : vector<2xf32>
    %10 = vector.multi_reduction <add>, %9, %cst_7 [1] : vector<2x32xf32> to vector<2xf32>
    %11 = vector.shape_cast %10 : vector<2xf32> to vector<2x1xf32>
    %c0_8 = arith.constant 0 : index
    %c0_9 = arith.constant 0 : index
    %12 = vector.load %arg5[%c0_8, %c0_9] : memref<1x1xf32, #tpu.memory_space<vmem>>, vector<1x1xf32>
    %13 = vector.broadcast %12 : vector<1x1xf32> to vector<2x1xf32>
    %14 = arith.addf %11, %13 : vector<2x1xf32>
    %15 = arith.negf %14 : vector<2x1xf32>
    %16 = math.exp %15 : vector<2x1xf32>
    %cst_10 = arith.constant 1.000000e+00 : f32
    %17 = vector.broadcast %cst_10 : f32 to vector<2x1xf32>
    %18 = arith.addf %17, %16 : vector<2x1xf32>
    %19 = arith.divf %17, %18 : vector<2x1xf32>
    %cst_11 = arith.constant 9.000000e+00 : f32
    %20 = vector.broadcast %cst_11 : f32 to vector<2x1xf32>
    %21 = arith.mulf %20, %19 : vector<2x1xf32>
    %cst_12 = arith.constant 3.000000e+00 : f32
    %22 = vector.broadcast %cst_12 : f32 to vector<2x1xf32>
    %23 = arith.addf %21, %22 : vector<2x1xf32>
    %24 = math.floor %23 : vector<2x1xf32>
    %cst_13 = arith.constant 3.000000e+00 : f32
    %25 = vector.broadcast %cst_13 : f32 to vector<2x1xf32>
    %26 = arith.subf %24, %25 : vector<2x1xf32>
    %cst_14 = arith.constant 0.000000e+00 : f32
    %cst_15 = arith.constant 9.000000e+00 : f32
    %27 = vector.broadcast %cst_14 : f32 to vector<2x1xf32>
    %28 = arith.maximumf %27, %26 : vector<2x1xf32>
    %29 = vector.broadcast %cst_15 : f32 to vector<2x1xf32>
    %30 = arith.minimumf %29, %28 : vector<2x1xf32>
    %31 = arith.fptosi %30 : vector<2x1xf32> to vector<2x1xi32>
    %c0_16 = arith.constant 0 : index
    %c0_17 = arith.constant 0 : index
    %32 = vector.load %arg0[%c0_16, %c0_17] : memref<32x32xf32, #tpu.memory_space<vmem>>, vector<32x32xf32>
    %c0_18 = arith.constant 0 : index
    %c0_19 = arith.constant 0 : index
    %33 = vector.load %arg6[%c0_18, %c0_19] : memref<32x32xf32, #tpu.memory_space<vmem>>, vector<32x32xf32>
    %cst_20 = arith.constant dense<0.000000e+00> : vector<32x32xf32>
    %34 = tpu.matmul %32, %33, %cst_20 {dimension_numbers = #tpu.dot_dimension_numbers<[1], [0], [0], [1], [0, 0, 1, 1], [], []>} : vector<32x32xf32>, vector<32x32xf32>, vector<32x32xf32> -> vector<32x32xf32>
    %c0_21 = arith.constant 0 : index
    %c0_22 = arith.constant 0 : index
    %35 = vector.load %arg7[%c0_21, %c0_22] : memref<1x32xf32, #tpu.memory_space<vmem>>, vector<1x32xf32>
    %36 = vector.broadcast %35 : vector<1x32xf32> to vector<32x32xf32>
    %37 = arith.addf %34, %36 : vector<32x32xf32>
    %38 = tpu.iota {dimensions = array<i32: 0>} : vector<14x1xi32>
    %39 = tpu.iota {dimensions = array<i32: 1>} : vector<14x32xi32>
    %c0_i32 = arith.constant 0 : i32
    %40 = vector.broadcast %c0_i32 : i32 to vector<14x1xi32>
    %c0_i32_23 = arith.constant 0 : i32
    %41 = vector.broadcast %c0_i32_23 : i32 to vector<14x1xi32>
    %42 = vector.extract_strided_slice %31 {offsets = [0, 0], sizes = [1, 1], strides = [1, 1]} : vector<2x1xi32> to vector<1x1xi32>
    %43 = vector.broadcast %42 : vector<1x1xi32> to vector<14x1xi32>
    %44 = arith.addi %41, %43 : vector<14x1xi32>
    %c0_i32_24 = arith.constant 0 : i32
    %45 = vector.broadcast %c0_i32_24 : i32 to vector<14x1xi32>
    %46 = arith.cmpi sge, %38, %45 : vector<14x1xi32>
    %c7_i32 = arith.constant 7 : i32
    %47 = vector.broadcast %c7_i32 : i32 to vector<14x1xi32>
    %48 = arith.cmpi slt, %38, %47 : vector<14x1xi32>
    %49 = arith.andi %46, %48 : vector<14x1xi1>
    %50 = arith.select %49, %44, %40 : vector<14x1xi1>, vector<14x1xi32>
    %c9_i32 = arith.constant 9 : i32
    %51 = vector.broadcast %c9_i32 : i32 to vector<14x1xi32>
    %52 = vector.extract_strided_slice %31 {offsets = [1, 0], sizes = [1, 1], strides = [1, 1]} : vector<2x1xi32> to vector<1x1xi32>
    %53 = vector.broadcast %52 : vector<1x1xi32> to vector<14x1xi32>
    %54 = arith.addi %51, %53 : vector<14x1xi32>
    %c7_i32_25 = arith.constant 7 : i32
    %55 = vector.broadcast %c7_i32_25 : i32 to vector<14x1xi32>
    %56 = arith.cmpi sge, %38, %55 : vector<14x1xi32>
    %c14_i32 = arith.constant 14 : i32
    %57 = vector.broadcast %c14_i32 : i32 to vector<14x1xi32>
    %58 = arith.cmpi slt, %38, %57 : vector<14x1xi32>
    %59 = arith.andi %56, %58 : vector<14x1xi1>
    %60 = arith.select %59, %54, %50 : vector<14x1xi1>, vector<14x1xi32>
    %61 = arith.addi %38, %60 : vector<14x1xi32>
    %62 = vector.broadcast %61 : vector<14x1xi32> to vector<14x32xi32>
    %63 = arith.cmpi eq, %39, %62 : vector<14x32xi32>
    %cst_26 = arith.constant 1.000000e+00 : f32
    %cst_27 = arith.constant 0.000000e+00 : f32
    %64 = vector.broadcast %cst_26 : f32 to vector<14x32xf32>
    %65 = vector.broadcast %cst_27 : f32 to vector<14x32xf32>
    %66 = arith.select %63, %64, %65 : vector<14x32xi1>, vector<14x32xf32>
    %cst_28 = arith.constant dense<0.000000e+00> : vector<14x32xf32>
    %67 = tpu.matmul %66, %37, %cst_28 {dimension_numbers = #tpu.dot_dimension_numbers<[1], [0], [0], [1], [0, 0, 1, 1], [], []>} : vector<14x32xf32>, vector<32x32xf32>, vector<14x32xf32> -> vector<14x32xf32>
    %c0_29 = arith.constant 0 : index
    %c0_30 = arith.constant 0 : index
    %68 = vector.load %arg9[%c0_29, %c0_30] : memref<14x32xf32, #tpu.memory_space<vmem>>, vector<14x32xf32>
    tpu.vector_store %arg9[%c0_29, %c0_30], %67 {strides = array<i32>} : memref<14x32xf32, #tpu.memory_space<vmem>>, vector<14x32xf32>,
    %cst_31 = arith.constant dense<0.000000e+00> : vector<2x14xf32>
    %69 = tpu.matmul %0, %67, %cst_31 {dimension_numbers = #tpu.dot_dimension_numbers<[1], [1], [0], [0], [0, 0, 1, 0], [], []>} : vector<2x32xf32>, vector<14x32xf32>, vector<2x14xf32> -> vector<2x14xf32>
    %70 = tpu.iota {dimensions = array<i32: 0>} : vector<2x7xi32>
    %cst_32 = arith.constant 0.000000e+00 : f32
    %71 = vector.broadcast %cst_32 : f32 to vector<2x7xf32>
    %c0_i32_33 = arith.constant 0 : i32
    %72 = vector.broadcast %c0_i32_33 : i32 to vector<2x7xi32>
    %73 = arith.cmpi eq, %70, %72 : vector<2x7xi32>
    %74 = vector.extract_strided_slice %69 {offsets = [0, 0], sizes = [2, 7], strides = [1, 1]} : vector<2x14xf32> to vector<2x7xf32>
    %75 = arith.select %73, %74, %71 : vector<2x7xi1>, vector<2x7xf32>
    %c1_i32 = arith.constant 1 : i32
    %76 = vector.broadcast %c1_i32 : i32 to vector<2x7xi32>
    %77 = arith.cmpi eq, %70, %76 : vector<2x7xi32>
    %78 = vector.extract_strided_slice %69 {offsets = [0, 7], sizes = [2, 7], strides = [1, 1]} : vector<2x14xf32> to vector<2x7xf32>
    %79 = arith.select %77, %78, %75 : vector<2x7xi1>, vector<2x7xf32>
    %80 = tpu.iota {dimensions = array<i32: 1>} : vector<2x7xi32>
    %81 = arith.sitofp %80 : vector<2x7xi32> to vector<2x7xf32>
    %cst_34 = arith.constant 3.000000e+00 : f32
    %82 = vector.broadcast %cst_34 : f32 to vector<2x1xf32>
    %83 = arith.subf %24, %82 : vector<2x1xf32>
    %84 = vector.broadcast %83 : vector<2x1xf32> to vector<2x7xf32>
    %85 = arith.addf %84, %81 : vector<2x7xf32>
    %86 = vector.broadcast %23 : vector<2x1xf32> to vector<2x7xf32>
    %87 = arith.subf %85, %86 : vector<2x7xf32>
    %88 = arith.mulf %87, %87 : vector<2x7xf32>
    %cst_35 = arith.constant 0.000000e+00 : f32
    %89 = vector.broadcast %cst_35 : f32 to vector<2x7xf32>
    %90 = arith.subf %89, %88 : vector<2x7xf32>
    %cst_36 = arith.constant 4.500000e+00 : f32
    %91 = vector.broadcast %cst_36 : f32 to vector<2x7xf32>
    %92 = arith.divf %90, %91 : vector<2x7xf32>
    %93 = math.exp %92 : vector<2x7xf32>
    %94 = arith.mulf %79, %93 : vector<2x7xf32>
    %cst_37 = arith.constant dense<0xFF800000> : vector<2xf32>
    %95 = vector.multi_reduction <maximumf>, %94, %cst_37 [1] : vector<2x7xf32> to vector<2xf32>
    %96 = vector.shape_cast %95 : vector<2xf32> to vector<2x1xf32>
    %97 = vector.broadcast %96 : vector<2x1xf32> to vector<2x7xf32>
    %98 = arith.subf %94, %97 : vector<2x7xf32>
    %99 = math.exp %98 : vector<2x7xf32>
    %cst_38 = arith.constant dense<0.000000e+00> : vector<2xf32>
    %100 = vector.multi_reduction <add>, %99, %cst_38 [1] : vector<2x7xf32> to vector<2xf32>
    %101 = vector.shape_cast %100 : vector<2xf32> to vector<2x1xf32>
    %102 = vector.broadcast %101 : vector<2x1xf32> to vector<2x7xf32>
    %103 = arith.divf %99, %102 : vector<2x7xf32>
    %c0_39 = arith.constant 0 : index
    %c0_40 = arith.constant 0 : index
    %104 = vector.load %arg8[%c0_39, %c0_40] : memref<2x7xf32, #tpu.memory_space<vmem>>, vector<2x7xf32>
    tpu.vector_store %arg8[%c0_39, %c0_40], %103 {strides = array<i32>} : memref<2x7xf32, #tpu.memory_space<vmem>>, vector<2x7xf32>,
    return
  }
}

</mosaic_0001>

<bundles_post_ra>
// kernel: local_attention.1
= control target key start
LH: loop header
LB: loop body
LE: loop exit
PB: predicated region body
PF: predicated region fallthrough
CT: control target
= control target key end

     0   :  { %s898_s0 = inlined_call_operand.hbm [shape: f32[32,32], index: 0, kind: input, shape index: {}]   ;;  %s899_s1 = inlined_call_operand.vmem [shape: f32[2,32], index: 1, kind: input, shape index: {}]   ;;  %s900_s2 = inlined_call_operand.hbm [shape: f32[32,32], index: 2, kind: input, shape index: {}]   ;;  %s901_s3 = inlined_call_operand.vmem [shape: f32[1,32], index: 3, kind: input, shape index: {}]   ;;  %s902_s4 = inlined_call_operand.vmem [shape: f32[1,32], index: 4, kind: input, shape index: {}]   ;;  %s903_s5 = inlined_call_operand.<no memory space> [shape: f32[1,1], index: 5, kind: input, shape index: {}]   ;;  %s904_s6 = inlined_call_operand.hbm [shape: f32[32,32], index: 6, kind: input, shape index: {}]   ;;  %s905_s7 = inlined_call_operand.vmem [shape: f32[1,32], index: 7, kind: input, shape index: {}]   ;;  %s906_s8 = inlined_call_operand.hbm [shape: f32[2,7], index: 8, kind: output, shape index: {0}]   ;;  %s907_s9 = inlined_call_operand.vmem [shape: f32[14,32], index: 9, kind: output, shape index: {1}]  }
   0x1   :  { %v15_v0 = vstv %s903_s5 }
   0x2   :  { %16 = vst [vmem:[#allocation2] sm:$0x1] %v15_v0 }
   0x3   :  { %17 = vsyncpa [#allocation4], 0 }
   0x4   :  { %18 = vsyncpa [#allocation7], 0 }
   0x5   :  { %19 = vsyncpa [#allocation5], 0  ;;  %s777_s11 = smov [#allocation6]   ;;  %s778_s13 = smov [#allocation3]  }
   0x6   :  { %s39_s12 = sshll.u32 %s777_s11, 4  ;;  %s25_s14 = sshll.u32 %s778_s13, 4  ;;  %s40_s12 = int_to_ptr.vmem [resolvable:$true] %s39_s12  ;;  %s26_s14 = int_to_ptr.vmem [resolvable:$true] %s25_s14 }
   0x7   :  { %s699_s15 = scalar_lea.vmem %s40_s12, 512  ;;  %p704_p1 = scmp.lt.s32.totalorder %s40_s12, %s40_s12 }
   0x8   :  { %p700_p0 = scmp.ne.s32.totalorder %s40_s12, %s699_s15  ;;  %p705_p2 = scmp.lt.s32.totalorder %s699_s15, %s699_s15 }
   0xa   :  { %p706_p3 = por %p705_p2, %p704_p1 }
   0xc   :  { %p707_p4 = pnand %p706_p3, %p700_p0 }
   0xe   :  { %710 = shalt.err (!%p707_p4)
}
   0xf   :  { %s779_s16 = smov 128   ;;  %s780_s17 = smov 8  }
  0x10   :  { %45 = dma.hbm_to_vmem [thread:$0]  %s900_s2, 512, %s40_s12, [#allocation7], %s779_s16, %s779_s16, %s780_s17  }
  0x11   :  { %s719_s19 = scalar_lea.vmem %s26_s14, 512  ;;  %p724_p6 = scmp.lt.s32.totalorder %s26_s14, %s26_s14 }
  0x12   :  { %p720_p5 = scmp.ne.s32.totalorder %s26_s14, %s719_s19  ;;  %p725_p7 = scmp.lt.s32.totalorder %s719_s19, %s719_s19 }
  0x14   :  { %p726_p8 = por %p725_p7, %p724_p6 }
  0x16   :  { %p727_p9 = pnand %p726_p8, %p720_p5 }
  0x18   :  { %730 = shalt.err (!%p727_p9)
}
  0x19   :  { %31 = dma.hbm_to_vmem [thread:$0]  %s898_s0, 512, %s26_s14, [#allocation4], %s779_s16, %s779_s16, %s780_s17  }
  0x1a   :  { %s781_s22 = smov [#allocation8]  }
  0x1b   :  { %s57_s23 = sshll.u32 %s781_s22, 4  ;;  %s58_s23 = int_to_ptr.vmem [resolvable:$true] %s57_s23 }
  0x1c   :  { %s739_s24 = scalar_lea.vmem %s58_s23, 512  ;;  %p744_p11 = scmp.lt.s32.totalorder %s58_s23, %s58_s23 }
  0x1d   :  { %p740_p10 = scmp.ne.s32.totalorder %s58_s23, %s739_s24  ;;  %p745_p12 = scmp.lt.s32.totalorder %s739_s24, %s739_s24 }
  0x1f   :  { %p746_p13 = por %p745_p12, %p744_p11 }
  0x21   :  { %p747_p0 = pnand %p746_p13, %p740_p10 }
  0x23   :  { %750 = shalt.err (!%p747_p0)
}
  0x24   :  { %63 = dma.hbm_to_vmem [thread:$0]  %s904_s6, 512, %s58_s23, [#allocation7], %s779_s16, %s779_s16, %s780_s17  }
  0x25   :  { %771 = dma.done.wait [#allocation4], 512  }
  0x26   :  { %772 = vsyncadd [#allocation4], 4294966784 }
  0x27   :  { %773 = dma.done.wait [#allocation7], 1024  }
  0x28   :  { %774 = vsyncadd [#allocation7], 4294966272  ;;  %v782_v1 = vmov 0.0   ;;  %vm783_vm0 = vmmov 0   ;;  %v79_v2 = vld [vmem:[#allocation6 + $0x18] sm:$0xff]  ;;  %v78_v3 = vld [vmem:[#allocation6 + $0x10] sm:$0xff]  ;;  %v307_v43 = vlaneseq }
  0x29   :  { %621 = vmatprep.subr.mxu0 %v782_v1  ;;  %629 = vmatprep.mubr.msk.f32.mxu0 %vm783_vm0, %v782_v1  ;;  %v77_v4 = vld [vmem:[#allocation6 + $0x8] sm:$0xff]  ;;  %v76_v5 = vld [vmem:[#allocation6] sm:$0xff]  ;;  %vm87_vm1 = vcmask 261120   ;;  %v202_v7 = vld [vmem:[#allocation8 + $0x18] sm:$0xff]  ;;  %vm170_vm2 = vcmask 254976   ;;  %v784_v23 = vmov 0  }
  0x2a   :  { %622 = vmatpush3.msra.mxu0 %v79_v2  ;;  %v858_v6 = vld [vmem:[%s899_s1] sm:$0x3]  ;;  %v201_v8 = vld [vmem:[#allocation8 + $0x10] sm:$0xff]  ;;  %632 = vmatprep.subr.mxu1 %v202_v7  ;;  %v200_v10 = vld [vmem:[#allocation8 + $0x8] sm:$0xff]  ;;  %v308_v46 = vshrl.u32 %v307_v43, 7  ;;  %v311_v61 = vand.u32 127, %v307_v43 }
  0x2b   :  { %623 = vmatprep.subr.mxu0 %v782_v1  ;;  %v195_v9 = vld [vmem:[#allocation3] sm:$0xff]  ;;  %633 = vmatpush3.msra.mxu1 %v202_v7  ;;  %v196_v12 = vld [vmem:[#allocation3 + $0x8] sm:$0xff]  ;;  %v197_v13 = vld [vmem:[#allocation3 + $0x10] sm:$0xff]  ;;  %vm431_vm8 = vcmask 259072   ;;  %s785_s11 = smov 7   ;;  %vm541_vm11 = vcmask 107576  }
  0x2c   :  { %624 = vmatpush3.msra.mxu0 %v78_v3  ;;  %640 = vmatprep.mubr.msk.f32.mxu1 %vm87_vm1, %v195_v9  ;;  %v199_v11 = vld [vmem:[#allocation8] sm:$0xff]  ;;  %v198_v14 = vld [vmem:[#allocation3 + $0x18] sm:$0xff]  ;;  %v314_v49 = vsub.s32 0, %v308_v46  ;;  %v326_v50 = vsub.s32 1, %v308_v46  ;;  %v309_v51 = vadd.s32 8, %v308_v46  ;;  %vm318_vm3 = vcmp.lt.s32.totalorder %v308_v46, 7 }
  0x2d   :  { %625 = vmatprep.subr.mxu0 %v782_v1  ;;  %634 = vmatprep.subr.mxu1 %v201_v8  ;;  %v583_v15 = vld [vmem:[%s901_s3] ss:$0 sm:$0xff]  ;;  %vm329_vm5 = vcmp.ge.s32.totalorder %v308_v46, 7  ;;  %v517_v7 = vcvt.s32.f32 %v311_v61  ;;  %vm509_vm9 = vcmp.eq.s32.totalorder %v308_v46, 0  ;;  %vm511_vm10 = vcmp.eq.s32.totalorder %v308_v46, 1  ;;  %s787_s12 = smov [#allocation9]  }
  0x2e   :  { %626 = vmatpush3.msra.mxu0 %v77_v4  ;;  %635 = vmatpush3.msra.mxu1 %v201_v8  ;;  %v585_v19 = vld [vmem:[%s902_s4] ss:$0 sm:$0xff]  ;;  %vm332_vm4 = vcmp.lt.s32.totalorder %v309_v51, 14  ;;  %vm552_vm12 = vcmask 50176   ;;  %s569_s13 = sshll.u32 %s787_s12, 4  ;;  %s570_s13 = int_to_ptr.vmem [resolvable:$true] %s569_s13 }
  0x2f   :  { %627 = vmatprep.subr.mxu0 %v782_v1  ;;  %636 = vmatprep.subr.mxu1 %v200_v10  ;;  %v589_v25 = vld [vmem:[%s905_s7] ss:$0 sm:$0xff]  ;;  %s751_s14 = scalar_lea.vmem %s570_s13, 32  ;;  %p756_p2 = scmp.lt.s32.totalorder %s570_s13, %s570_s13 }
  0x30   :  { %628 = vmatpush3.msra.mxu0 %v76_v5  ;;  %637 = vmatpush3.msra.mxu1 %v200_v10  ;;  %v586_v33 = vld [vmem:[#allocation2] ss:$0 sm:$0xff]  ;;  %p752_p1 = scmp.ne.s32.totalorder %s570_s13, %s751_s14  ;;  %p757_p3 = scmp.lt.s32.totalorder %s751_s14, %s751_s14 }
  0x31   :  { %630 = vmatmul.mubr.msk.f32.vlgmr.msra.gmra.mxu0 %vm87_vm1, %v858_v6  ;;  %638 = vmatprep.subr.mxu1 %v199_v11 }
  0x32   :  { %639 = vmatpush3.msra.mxu1 %v199_v11  ;;  %678 = vset.pattern.permute.xlu1 %v784_v23  ;;  %p758_p4 = por %p757_p3, %p756_p2 }
  0x33   :  { %641 = vmatmul.mubr.msk.f32.vlgmr.msra.gmra.mxu1 %vm87_vm1, %v196_v12  ;;  %657 = vmatprep.subr.mxu1 %v782_v1 }
  0x34   :  { %643 = vmatprep.mubr.msk.f32.mxu1 %vm87_vm1, %v197_v13  ;;  %677 = vset.pattern.permute.xlu0 %v784_v23  ;;  %p759_p5 = pnand %p758_p4, %p752_p1 }
  0x37   :  { %644 = vmatmul.mubr.msk.f32.gmra.mxu1 %vm87_vm1, %v198_v14 }
  0x38   :  { %661 = vmatprep.mubr.msk.f32.mxu1 %vm783_vm0, %v782_v1 }
  0xf1   :  { %v157_v16 = vpop.f32.mrf.mxu0 }
  0xf2   :  { %v158_v17 = vadd.f32 %v583_v15, %v157_v16 }
  0xf3   :  { %v631_v18 = vpop.f32.mrf.mxu0  ;;  %v642_v24 = vpop.f32.mrf.mxu1 }
  0xf4   :  { %679 = vtanh.f32 %v158_v17  ;;  %v294_v30 = vadd.f32 %v642_v24, %v589_v25 }
  0xf5   :  { %v288_v26 = vpop.f32.mrf.mxu1 }
  0xf6   :  { %v289_v32 = vadd.f32 %v589_v25, %v288_v26 }
  0xf7   :  { %v645_v27 = vpop.f32.mrf.mxu1 }
  0xf8   :  { %v304_v28 = vadd.f32 %v645_v27, %v589_v25 }
  0xf9   :  { %v298_v29 = vpop.f32.mrf.mxu1 }
  0xfa   :  { %v299_v31 = vadd.f32 %v589_v25, %v298_v29  ;;  %646 = vmatprep.subr.mxu0 %v304_v28 }
  0xfb   :  { %647 = vmatpush3.msra.mxu0 %v304_v28 }
  0xfc   :  { %648 = vmatprep.subr.mxu0 %v299_v31 }
  0xfd   :  { %649 = vmatpush3.msra.mxu0 %v299_v31 }
  0xfe   :  { %650 = vmatprep.subr.mxu0 %v294_v30 }
  0xff   :  { %651 = vmatpush3.msra.mxu0 %v294_v30 }
 0x100   :  { %652 = vmatprep.subr.mxu0 %v289_v32 }
 0x101   :  { %v680_v20 = vpop.eup %679  ;;  %653 = vmatpush3.msra.mxu0 %v289_v32 }
 0x102   :  { %v169_v21 = vmul.f32 %v680_v20, %v585_v19 }
 0x104   :  { %v171_v22 = vsel %vm170_vm2, %v169_v21, 0.0 }
 0x105   :  { %172 = vadd.xlane.f32.xlu0 %v171_v22 }
 0x18e   :  { %v173_v34 = vpop.xlane.xlu0 %172 }
 0x18f   :  { %v181_v35 = vadd.f32 %v586_v33, %v173_v34 }
 0x191   :  { %v587_v36 = vmul.f32 -1.442695, %v181_v35 }
 0x193   :  { %681 = vpow2.f32 %v587_v36 }
 0x1a0   :  { %v682_v37 = vpop.eup %681 }
 0x1a1   :  { %v185_v38 = vadd.f32 1.0, %v682_v37 }
 0x1a3   :  { %683 = vrcp.f32 %v185_v38 }
 0x1b0   :  { %v684_v39 = vpop.eup %683 }
 0x1b1   :  { %v188_v40 = vmul.f32 9.0, %v684_v39 }
 0x1b3   :  { %v189_v41 = vadd.f32 3.0, %v188_v40 }
 0x1b5   :  { %v190_v42 = vfloor.f32 %v189_v41 }
 0x1b7   :  { %v588_v44 = vadd.f32 -3.0, %v190_v42 }
 0x1b9   :  { %v192_v45 = vmax.f32 %v588_v44, 0.0 }
 0x1bb   :  { %v193_v47 = vmin.f32 %v192_v45, 9.0 }
 0x1bd   :  { %v664_v48 = vtrunc.f32 %v193_v47 }
 0x1bf   :  { %v665_v52 = vcvt.f32.s32 %v664_v48 }
 0x1c1   :  { %v327_v53 = vrot.slane %v665_v52, %v326_v50  ;;  %v315_v54 = vrot.slane %v665_v52, %v314_v49 }
 0x1c3   :  { %v328_v55 = vadd.s32 9, %v327_v53  ;;  %v322_v56 = vsel %vm318_vm3, %v315_v54, 0 }
 0x1c5   :  { %v336_v57 = vsel %vm332_vm4, %v328_v55, 0  ;;  %v335_v58 = vsel %vm329_vm5, %v328_v55, %v322_v56 }
 0x1c6   :  { %v338_v59 = vadd.s32 %v336_v57, %v309_v51  ;;  %v337_v60 = vadd.s32 %v335_v58, %v308_v46 }
 0x1c8   :  { %343 = vperm.xlu1 %678, %v338_v59   ;;  %340 = vperm.xlu0 %677, %v337_v60  }
 0x1cc   :  { %520 = vperm.xlu1 %678, %v588_v44  }
 0x1d0   :  { %526 = vperm.xlu1 %678, %v189_v41  }
 0x243   :  { %v344_v62 = vpop.permute.xlu1 %343  ;;  %v341_v63 = vpop.permute.xlu0 %340 }
 0x244   :  { %vm346_vm6 = vcmp.eq.s32.totalorder %v311_v61, %v344_v62  ;;  %vm345_vm7 = vcmp.eq.s32.totalorder %v311_v61, %v341_v63 }
 0x245   :  { %v348_v0 = vsel %vm346_vm6, 1.0, %v782_v1  ;;  %v347_v2 = vsel %vm345_vm7, 1.0, %v782_v1 }
 0x246   :  { %654 = vmatprep.mubr.msk.f32.mxu0 %vm87_vm1, %v347_v2 }
 0x247   :  { %655 = vmatmul.mubr.msk.f32.vlgmr.msra.gmra.mxu0 %vm87_vm1, %v348_v0  ;;  %v521_v5 = vpop.permute.xlu1 %520 }
 0x248   :  { %v523_v9 = vadd.f32 %v521_v5, %v517_v7 }
 0x24b   :  { %v527_v8 = vpop.permute.xlu1 %526 }
 0x24c   :  { %v529_v10 = vsub.f32 %v523_v9, %v527_v8 }
 0x24e   :  { %v530_v11 = vmul.f32 %v529_v10, %v529_v10 }
 0x250   :  { %v531_v12 = vsub.f32 0.0, %v530_v11 }
 0x252   :  { %v533_v13 = vmul.f32 0.22222222, %v531_v12 }
 0x254   :  { %v534_v14 = vmul.f32 1.442695, %v533_v13 }
 0x256   :  { %685 = vpow2.f32 %v534_v14 }
 0x263   :  { %v686_v17 = vpop.eup %685 }
 0x307   :  { %v656_v3 = vpop.f32.mrf.mxu0 }
 0x308   :  { %432 = vst.msk [vmem:[%s907_s9 + $0x8] sm:$0x3f] %vm431_vm8, %v656_v3  ;;  %658 = vmatpush3.xpose.msk.msra.mxu1 %vm87_vm1, %v656_v3 }
 0x309   :  { %v421_v4 = vpop.f32.mrf.mxu0  ;;  %659 = vmatprep.subr.mxu1 %v782_v1 }
 0x30a   :  { %430 = vst.msk [vmem:[%s907_s9] sm:$0xff] %vm87_vm1, %v421_v4  ;;  %s786_s9 = smov 121  }
 0x30c   :  { %660 = vmatpush3.xpose.msk.msra.mxu1 %vm87_vm1, %v421_v4 }
 0x30f   :  { %662 = vmatmul.mubr.msk.f32.vlgmr.msra.gmra.mxu1 %vm87_vm1, %v858_v6 }
 0x3cf   :  { %v505_v1 = vpop.f32.mrf.mxu1 }
 0x3d0   :  { %v510_v15 = vsel %vm509_vm9, %v505_v1, 0.0 }
 0x3d1   :  { %513 = vrot.lane.b32.xlu1 %v510_v15, %s785_s11  ;;  %v663_v16 = vpop.f32.mrf.mxu1 }
 0x3d5   :  { %537 = vrot.lane.b32.xlu1 %v686_v17, %s785_s11 }
 0x443   :  { %v514_v18 = vpop.permute.xlu1 %513 }
 0x444   :  { %v516_v6 = vsel %vm511_vm10, %v505_v1, %v514_v18 }
 0x447   :  { %v538_v19 = vpop.permute.xlu1 %537 }
 0x448   :  { %v540_v20 = vmul.f32 %v538_v19, %v516_v6 }
 0x44a   :  { %v542_v21 = vsel %vm541_vm11, %v540_v20, -inf }
 0x44b   :  { %543 = vmax.xlane.f32.xlu1 %v542_v21 }
 0x4d4   :  { %v544_v22 = vpop.xlane.xlu1 %543 }
 0x4d5   :  { %v545_v23 = vsub.f32 %v540_v20, %v544_v22 }
 0x4d7   :  { %v546_v24 = vmul.f32 1.442695, %v545_v23 }
 0x4d9   :  { %687 = vpow2.f32 %v546_v24 }
 0x4e6   :  { %v688_v25 = vpop.eup %687 }
 0x4e7   :  { %549 = vrot.lane.b32.xlu0 %v688_v25, %s786_s9 }
 0x559   :  { %v550_v26 = vpop.permute.xlu0 %549 }
 0x55a   :  { %v553_v27 = vsel %vm552_vm12, %v550_v26, 0.0 }
 0x55b   :  { %554 = vadd.xlane.f32.xlu0 %v553_v27 }
 0x5e4   :  { %v555_v28 = vpop.xlane.xlu0 %554 }
 0x5e5   :  { %689 = vrcp.f32 %v555_v28 }
 0x5f2   :  { %v690_v29 = vpop.eup %689 }
 0x5f3   :  { %v557_v30 = vmul.f32 %v690_v29, %v688_v25 }
 0x5f5   :  { %559 = vrot.lane.b32.xlu1 %v557_v30, %s786_s9 }
 0x667   :  { %v560_v31 = vpop.permute.xlu1 %559 }
 0x668   :  { %562 = vst.msk [vmem:[#allocation9] sm:$0x3] %vm552_vm12, %v560_v31 }
 0x669   :  { %762 = shalt.err (!%p759_p5)
}
 0x66a   :  { %572 = dma.vmem_to_hbm [thread:$0]  %s570_s13, 32, %s906_s8, [#allocation5]  }
 0x66b   :  { %775 = dma.done.wait [#allocation5], 32  }
 0x66c   :  { %776 = vsyncadd [#allocation5], 4294967264 }
 0x66d   :  { %580 = vsyncpa [#allocation4], 1 }
 0x66e   :  { %581 = vsyncpa [#allocation7], 1 }
 0x66f   :  { %582 = vsyncpa [#allocation5], 1 }

</bundles_post_ra>
